<compile_context>
chip_gen: v6e
topology: v6e:2x2x1
jax: 0.10.0
libtpu: 0.0.40
codegen_flags: <defaults>
</compile_context>

<pallas_src>
import jax
import jax.numpy as jnp
from jax import lax
from jax.experimental import pallas as pl
from jax.experimental.pallas import tpu as pltpu

B, S, H = 2, 8, 32
NH = 4
DH = H // NH


def _t5_attention_kernel(x_ref, mask_ref, bias_ref, wqkv_ref, wo_ref, o_ref, ctx_ref):
    # x_ref:    (B*S, H)   flattened hidden states
    # mask_ref: (B, 1, S)  additive mask over key positions
    # bias_ref: (NH, S, S) additive position bias (shared across batch)
    # wqkv_ref: (H, 3H)    packed Wq | Wk | Wv
    # wo_ref:   (H, H)
    # o_ref:    (B*S, H)   output
    # ctx_ref:  (B*S, H)   VMEM scratch holding the per-head contexts
    x = x_ref[...]                                                       # (B*S, H)

    # one fused QKV projection (single MXU push instead of three)
    qkv = jnp.dot(x, wqkv_ref[...], preferred_element_type=jnp.float32)  # (B*S, 3H)
    q = qkv[:, 0 * H:1 * H]
    k = qkv[:, 1 * H:2 * H]
    v = qkv[:, 2 * H:3 * H]

    bias = bias_ref[...]                               # (NH, S, S), loaded once

    # contract the last axis of both operands: q @ k^T with no explicit transpose
    dn = (((1,), (1,)), ((), ()))

    for b in range(B):                                 # static unroll, B=2
        rows = slice(b * S, (b + 1) * S)
        # hoisted: bias + mask broadcast done once per batch, not once per head
        biasm = bias + mask_ref[b]                     # (NH,S,S) + (1,S) -> (NH,S,S)
        for h in range(NH):                            # static unroll, NH=4
            cols = slice(h * DH, (h + 1) * DH)
            qh = q[rows, cols]                         # (S, DH)
            kh = k[rows, cols]                         # (S, DH)
            vh = v[rows, cols]                         # (S, DH)
            # T5 convention: no 1/sqrt(d); scores = q k^T + position_bias + mask
            scores = lax.dot_general(qh, kh, dn, preferred_element_type=jnp.float32)
            scores = scores + biasm[h]                 # (S, S)
            m = jnp.max(scores, axis=-1, keepdims=True)
            p = jnp.exp(scores - m)
            denom = jnp.sum(p, axis=-1, keepdims=True)
            attn = p * pl.reciprocal(denom, approx=False)  # approx=True at real sizes
            ctx_ref[rows, cols] = jnp.dot(attn, vh, preferred_element_type=jnp.float32)

    # single output projection over all heads (K=H contraction) + residual
    o_ref[...] = x + jnp.dot(ctx_ref[...], wo_ref[...],
                             preferred_element_type=jnp.float32)


def t5_self_attention(hidden_states, attention_mask, position_bias, wqkv, wo):
    """Single-invocation Pallas hot path: all B*S rows in one kernel call (no grid)."""
    x_flat = hidden_states.reshape(B * S, H)          # free reshape outside the kernel
    bias = position_bias.reshape(NH, S, S)            # drop the leading broadcast dim
    out_flat = pl.pallas_call(
        _t5_attention_kernel,
        out_shape=jax.ShapeDtypeStruct((B * S, H), jnp.float32),
        scratch_shapes=[pltpu.VMEM((B * S, H), jnp.float32)],
    )(x_flat, attention_mask, bias, wqkv, wo)
    return out_flat.reshape(B, S, H)


class T5SelfAttentionModule:
    """The wrapped `module`: returns (hidden_states, position_bias), mirroring HF T5
    layers which pass position_bias through."""

    def __init__(self, wq, wk, wv, wo):
        self.wqkv = jnp.concatenate([wq, wk, wv], axis=1)   # (H, 3H) packed once
        self.wo = wo

    def __call__(self, hidden_states, attention_mask, position_bias, **kwargs):
        out = t5_self_attention(hidden_states, attention_mask, position_bias,
                                self.wqkv, self.wo)
        return (out, position_bias)


class CheckpointWrapper:
    """JAX equivalent of the PyTorch CheckpointWrapper.

    Forward semantics are identical either way; the checkpoint branch only affects
    gradient recomputation (jax.checkpoint / remat).  The PyTorch None<->empty-tensor
    dance is a torch.utils.checkpoint workaround and is a no-op on forward outputs,
    so outputs are returned unchanged.
    """

    def __init__(self, module, use_checkpoint=False):
        self.module = module
        self.use_checkpoint = use_checkpoint

    def __call__(self, hidden_states, attention_mask, position_bias, **kwargs):
        if self.use_checkpoint:
            kwargs = {k: v for k, v in kwargs.items() if v is not None}
            fn = jax.checkpoint(lambda h, m, p: self.module(h, m, p, **kwargs))
            return fn(hidden_states, attention_mask, position_bias)
        return self.module(hidden_states, attention_mask, position_bias, **kwargs)


def _reference(hidden_states, attention_mask, position_bias, wq, wk, wv, wo):
    # Plain-JAX reference for sanity checking the kernel.
    q = hidden_states @ wq
    k = hidden_states @ wk
    v = hidden_states @ wv
    q = q.reshape(B, S, NH, DH).transpose(0, 2, 1, 3)
    k = k.reshape(B, S, NH, DH).transpose(0, 2, 1, 3)
    v = v.reshape(B, S, NH, DH).transpose(0, 2, 1, 3)
    scores = jnp.einsum("bhqd,bhkd->bhqk", q, k) + position_bias \
        + attention_mask[:, None, :, :]
    attn = jax.nn.softmax(scores, axis=-1)
    ctx = jnp.einsum("bhqk,bhkd->bhqd", attn, v)
    ctx = ctx.transpose(0, 2, 1, 3).reshape(B, S, H)
    return hidden_states + ctx @ wo


if __name__ == "__main__":
    key = jax.random.PRNGKey(0)
    kx, kb, kq, kk, kv, ko = jax.random.split(key, 6)

    hidden_states = jax.random.normal(kx, (B, S, H), dtype=jnp.float32)
    # additive attention mask: last 2 key positions of batch 1 are masked out
    mask = jnp.zeros((B, 1, S), dtype=jnp.float32)
    mask = mask.at[1, 0, S - 2:].set(-1e9)
    position_bias = 0.1 * jax.random.normal(kb, (1, NH, S, S), dtype=jnp.float32)

    scale = 1.0 / jnp.sqrt(H)
    wq = scale * jax.random.normal(kq, (H, H), dtype=jnp.float32)
    wk = scale * jax.random.normal(kk, (H, H), dtype=jnp.float32)
    wv = scale * jax.random.normal(kv, (H, H), dtype=jnp.float32)
    wo = scale * jax.random.normal(ko, (H, H), dtype=jnp.float32)

    module = T5SelfAttentionModule(wq, wk, wv, wo)
    wrapper = CheckpointWrapper(module, use_checkpoint=False)

    out, pbias_out = wrapper(hidden_states, mask, position_bias)
    out = jax.block_until_ready(out)

    ref = _reference(hidden_states, mask, position_bias, wq, wk, wv, wo)
    assert out.shape == (B, S, H)
    assert jnp.allclose(out, ref, atol=1e-4, rtol=1e-4), "kernel mismatch vs reference"
    assert pbias_out.shape == (1, NH, S, S)

    print("KERNEL_OK")
</pallas_src>

<mosaic_0001>
module attributes {stable_mosaic.version = 11 : i64} {
  func.func @_t5_attention_kernel(%arg0: memref<16x32xf32, #tpu.memory_space<vmem>>, %arg1: memref<2x1x8xf32, #tpu.memory_space<vmem>>, %arg2: memref<4x8x8xf32, #tpu.memory_space<vmem>>, %arg3: memref<32x96xf32, #tpu.memory_space<vmem>>, %arg4: memref<32x32xf32, #tpu.memory_space<vmem>>, %arg5: memref<16x32xf32, #tpu.memory_space<vmem>>, %arg6: memref<16x32xf32, #tpu.memory_space<vmem>>) attributes {dimension_semantics = [], scalar_prefetch = 0 : i64, scratch_operands = 1 : i64, tpu.core_type = #tpu.core_type<tc>} {
    %c0 = arith.constant 0 : index
    %c0_0 = arith.constant 0 : index
    %0 = vector.load %arg0[%c0, %c0_0] : memref<16x32xf32, #tpu.memory_space<vmem>>, vector<16x32xf32>
    %c0_1 = arith.constant 0 : index
    %c0_2 = arith.constant 0 : index
    %1 = vector.load %arg3[%c0_1, %c0_2] : memref<32x96xf32, #tpu.memory_space<vmem>>, vector<32x96xf32>
    %cst = arith.constant dense<0.000000e+00> : vector<16x96xf32>
    %2 = tpu.matmul %0, %1, %cst {dimension_numbers = #tpu.dot_dimension_numbers<[1], [0], [0], [1], [0, 0, 1, 1], [], []>} : vector<16x32xf32>, vector<32x96xf32>, vector<16x96xf32> -> vector<16x96xf32>
    %3 = vector.extract_strided_slice %2 {offsets = [0, 0], sizes = [16, 32], strides = [1, 1]} : vector<16x96xf32> to vector<16x32xf32>
    %4 = vector.extract_strided_slice %2 {offsets = [0, 32], sizes = [16, 32], strides = [1, 1]} : vector<16x96xf32> to vector<16x32xf32>
    %5 = vector.extract_strided_slice %2 {offsets = [0, 64], sizes = [16, 32], strides = [1, 1]} : vector<16x96xf32> to vector<16x32xf32>
    %c0_3 = arith.constant 0 : index
    %c0_4 = arith.constant 0 : index
    %c0_5 = arith.constant 0 : index
    %6 = vector.load %arg2[%c0_3, %c0_4, %c0_5] : memref<4x8x8xf32, #tpu.memory_space<vmem>>, vector<4x8x8xf32>
    %c0_6 = arith.constant 0 : index
    %c0_7 = arith.constant 0 : index
    %c0_8 = arith.constant 0 : index
    %7 = vector.load %arg1[%c0_6, %c0_7, %c0_8] : memref<2x1x8xf32, #tpu.memory_space<vmem>>, vector<1x1x8xf32>
    %8 = vector.shape_cast %7 : vector<1x1x8xf32> to vector<1x8xf32>
    %9 = vector.shape_cast %8 : vector<1x8xf32> to vector<1x1x8xf32>
    %10 = vector.broadcast %9 : vector<1x1x8xf32> to vector<4x8x8xf32>
    %11 = arith.addf %6, %10 : vector<4x8x8xf32>
    %12 = vector.extract_strided_slice %3 {offsets = [0, 0], sizes = [8, 8], strides = [1, 1]} : vector<16x32xf32> to vector<8x8xf32>
    %13 = vector.extract_strided_slice %4 {offsets = [0, 0], sizes = [8, 8], strides = [1, 1]} : vector<16x32xf32> to vector<8x8xf32>
    %14 = vector.extract_strided_slice %5 {offsets = [0, 0], sizes = [8, 8], strides = [1, 1]} : vector<16x32xf32> to vector<8x8xf32>
    %cst_9 = arith.constant dense<0.000000e+00> : vector<8x8xf32>
    %15 = tpu.matmul %12, %13, %cst_9 {dimension_numbers = #tpu.dot_dimension_numbers<[1], [1], [0], [0], [0, 0, 1, 0], [], []>} : vector<8x8xf32>, vector<8x8xf32>, vector<8x8xf32> -> vector<8x8xf32>
    %16 = vector.extract_strided_slice %11 {offsets = [0, 0, 0], sizes = [1, 8, 8], strides = [1, 1, 1]} : vector<4x8x8xf32> to vector<1x8x8xf32>
    %17 = vector.shape_cast %16 : vector<1x8x8xf32> to vector<8x8xf32>
    %18 = arith.addf %15, %17 : vector<8x8xf32>
    %cst_10 = arith.constant dense<0xFF800000> : vector<8xf32>
    %19 = vector.multi_reduction <maximumf>, %18, %cst_10 [1] : vector<8x8xf32> to vector<8xf32>
    %20 = vector.shape_cast %19 : vector<8xf32> to vector<8x1xf32>
    %21 = vector.broadcast %20 : vector<8x1xf32> to vector<8x8xf32>
    %22 = arith.subf %18, %21 : vector<8x8xf32>
    %23 = math.exp %22 : vector<8x8xf32>
    %cst_11 = arith.constant dense<0.000000e+00> : vector<8xf32>
    %24 = vector.multi_reduction <add>, %23, %cst_11 [1] : vector<8x8xf32> to vector<8xf32>
    %25 = vector.shape_cast %24 : vector<8xf32> to vector<8x1xf32>
    %26 = tpu.reciprocal %25 : vector<8x1xf32> -> vector<8x1xf32>
    %27 = vector.broadcast %26 : vector<8x1xf32> to vector<8x8xf32>
    %28 = arith.mulf %23, %27 : vector<8x8xf32>
    %cst_12 = arith.constant dense<0.000000e+00> : vector<8x8xf32>
    %29 = tpu.matmul %28, %14, %cst_12 {dimension_numbers = #tpu.dot_dimension_numbers<[1], [0], [0], [1], [0, 0, 1, 1], [], []>} : vector<8x8xf32>, vector<8x8xf32>, vector<8x8xf32> -> vector<8x8xf32>
    %c0_13 = arith.constant 0 : index
    %c0_14 = arith.constant 0 : index
    %30 = vector.load %arg6[%c0_13, %c0_14] : memref<16x32xf32, #tpu.memory_space<vmem>>, vector<8x8xf32>
    tpu.vector_store %arg6[%c0_13, %c0_14], %29 {strides = array<i32>} : memref<16x32xf32, #tpu.memory_space<vmem>>, vector<8x8xf32>,
    %31 = vector.extract_strided_slice %3 {offsets = [0, 8], sizes = [8, 8], strides = [1, 1]} : vector<16x32xf32> to vector<8x8xf32>
    %32 = vector.extract_strided_slice %4 {offsets = [0, 8], sizes = [8, 8], strides = [1, 1]} : vector<16x32xf32> to vector<8x8xf32>
    %33 = vector.extract_strided_slice %5 {offsets = [0, 8], sizes = [8, 8], strides = [1, 1]} : vector<16x32xf32> to vector<8x8xf32>
    %cst_15 = arith.constant dense<0.000000e+00> : vector<8x8xf32>
    %34 = tpu.matmul %31, %32, %cst_15 {dimension_numbers = #tpu.dot_dimension_numbers<[1], [1], [0], [0], [0, 0, 1, 0], [], []>} : vector<8x8xf32>, vector<8x8xf32>, vector<8x8xf32> -> vector<8x8xf32>
    %35 = vector.extract_strided_slice %11 {offsets = [1, 0, 0], sizes = [1, 8, 8], strides = [1, 1, 1]} : vector<4x8x8xf32> to vector<1x8x8xf32>
    %36 = vector.shape_cast %35 : vector<1x8x8xf32> to vector<8x8xf32>
    %37 = arith.addf %34, %36 : vector<8x8xf32>
    %cst_16 = arith.constant dense<0xFF800000> : vector<8xf32>
    %38 = vector.multi_reduction <maximumf>, %37, %cst_16 [1] : vector<8x8xf32> to vector<8xf32>
    %39 = vector.shape_cast %38 : vector<8xf32> to vector<8x1xf32>
    %40 = vector.broadcast %39 : vector<8x1xf32> to vector<8x8xf32>
    %41 = arith.subf %37, %40 : vector<8x8xf32>
    %42 = math.exp %41 : vector<8x8xf32>
    %cst_17 = arith.constant dense<0.000000e+00> : vector<8xf32>
    %43 = vector.multi_reduction <add>, %42, %cst_17 [1] : vector<8x8xf32> to vector<8xf32>
    %44 = vector.shape_cast %43 : vector<8xf32> to vector<8x1xf32>
    %45 = tpu.reciprocal %44 : vector<8x1xf32> -> vector<8x1xf32>
    %46 = vector.broadcast %45 : vector<8x1xf32> to vector<8x8xf32>
    %47 = arith.mulf %42, %46 : vector<8x8xf32>
    %cst_18 = arith.constant dense<0.000000e+00> : vector<8x8xf32>
    %48 = tpu.matmul %47, %33, %cst_18 {dimension_numbers = #tpu.dot_dimension_numbers<[1], [0], [0], [1], [0, 0, 1, 1], [], []>} : vector<8x8xf32>, vector<8x8xf32>, vector<8x8xf32> -> vector<8x8xf32>
    %c0_19 = arith.constant 0 : index
    %c8 = arith.constant 8 : index
    %49 = vector.load %arg6[%c0_19, %c8] : memref<16x32xf32, #tpu.memory_space<vmem>>, vector<8x8xf32>
    tpu.vector_store %arg6[%c0_19, %c8], %48 {strides = array<i32>} : memref<16x32xf32, #tpu.memory_space<vmem>>, vector<8x8xf32>,
    %50 = vector.extract_strided_slice %3 {offsets = [0, 16], sizes = [8, 8], strides = [1, 1]} : vector<16x32xf32> to vector<8x8xf32>
    %51 = vector.extract_strided_slice %4 {offsets = [0, 16], sizes = [8, 8], strides = [1, 1]} : vector<16x32xf32> to vector<8x8xf32>
    %52 = vector.extract_strided_slice %5 {offsets = [0, 16], sizes = [8, 8], strides = [1, 1]} : vector<16x32xf32> to vector<8x8xf32>
    %cst_20 = arith.constant dense<0.000000e+00> : vector<8x8xf32>
    %53 = tpu.matmul %50, %51, %cst_20 {dimension_numbers = #tpu.dot_dimension_numbers<[1], [1], [0], [0], [0, 0, 1, 0], [], []>} : vector<8x8xf32>, vector<8x8xf32>, vector<8x8xf32> -> vector<8x8xf32>
    %54 = vector.extract_strided_slice %11 {offsets = [2, 0, 0], sizes = [1, 8, 8], strides = [1, 1, 1]} : vector<4x8x8xf32> to vector<1x8x8xf32>
    %55 = vector.shape_cast %54 : vector<1x8x8xf32> to vector<8x8xf32>
    %56 = arith.addf %53, %55 : vector<8x8xf32>
    %cst_21 = arith.constant dense<0xFF800000> : vector<8xf32>
    %57 = vector.multi_reduction <maximumf>, %56, %cst_21 [1] : vector<8x8xf32> to vector<8xf32>
    %58 = vector.shape_cast %57 : vector<8xf32> to vector<8x1xf32>
    %59 = vector.broadcast %58 : vector<8x1xf32> to vector<8x8xf32>
    %60 = arith.subf %56, %59 : vector<8x8xf32>
    %61 = math.exp %60 : vector<8x8xf32>
    %cst_22 = arith.constant dense<0.000000e+00> : vector<8xf32>
    %62 = vector.multi_reduction <add>, %61, %cst_22 [1] : vector<8x8xf32> to vector<8xf32>
    %63 = vector.shape_cast %62 : vector<8xf32> to vector<8x1xf32>
    %64 = tpu.reciprocal %63 : vector<8x1xf32> -> vector<8x1xf32>
    %65 = vector.broadcast %64 : vector<8x1xf32> to vector<8x8xf32>
    %66 = arith.mulf %61, %65 : vector<8x8xf32>
    %cst_23 = arith.constant dense<0.000000e+00> : vector<8x8xf32>
    %67 = tpu.matmul %66, %52, %cst_23 {dimension_numbers = #tpu.dot_dimension_numbers<[1], [0], [0], [1], [0, 0, 1, 1], [], []>} : vector<8x8xf32>, vector<8x8xf32>, vector<8x8xf32> -> vector<8x8xf32>
    %c0_24 = arith.constant 0 : index
    %c16 = arith.constant 16 : index
    %68 = vector.load %arg6[%c0_24, %c16] : memref<16x32xf32, #tpu.memory_space<vmem>>, vector<8x8xf32>
    tpu.vector_store %arg6[%c0_24, %c16], %67 {strides = array<i32>} : memref<16x32xf32, #tpu.memory_space<vmem>>, vector<8x8xf32>,
    %69 = vector.extract_strided_slice %3 {offsets = [0, 24], sizes = [8, 8], strides = [1, 1]} : vector<16x32xf32> to vector<8x8xf32>
    %70 = vector.extract_strided_slice %4 {offsets = [0, 24], sizes = [8, 8], strides = [1, 1]} : vector<16x32xf32> to vector<8x8xf32>
    %71 = vector.extract_strided_slice %5 {offsets = [0, 24], sizes = [8, 8], strides = [1, 1]} : vector<16x32xf32> to vector<8x8xf32>
    %cst_25 = arith.constant dense<0.000000e+00> : vector<8x8xf32>
    %72 = tpu.matmul %69, %70, %cst_25 {dimension_numbers = #tpu.dot_dimension_numbers<[1], [1], [0], [0], [0, 0, 1, 0], [], []>} : vector<8x8xf32>, vector<8x8xf32>, vector<8x8xf32> -> vector<8x8xf32>
    %73 = vector.extract_strided_slice %11 {offsets = [3, 0, 0], sizes = [1, 8, 8], strides = [1, 1, 1]} : vector<4x8x8xf32> to vector<1x8x8xf32>
    %74 = vector.shape_cast %73 : vector<1x8x8xf32> to vector<8x8xf32>
    %75 = arith.addf %72, %74 : vector<8x8xf32>
    %cst_26 = arith.constant dense<0xFF800000> : vector<8xf32>
    %76 = vector.multi_reduction <maximumf>, %75, %cst_26 [1] : vector<8x8xf32> to vector<8xf32>
    %77 = vector.shape_cast %76 : vector<8xf32> to vector<8x1xf32>
    %78 = vector.broadcast %77 : vector<8x1xf32> to vector<8x8xf32>
    %79 = arith.subf %75, %78 : vector<8x8xf32>
    %80 = math.exp %79 : vector<8x8xf32>
    %cst_27 = arith.constant dense<0.000000e+00> : vector<8xf32>
    %81 = vector.multi_reduction <add>, %80, %cst_27 [1] : vector<8x8xf32> to vector<8xf32>
    %82 = vector.shape_cast %81 : vector<8xf32> to vector<8x1xf32>
    %83 = tpu.reciprocal %82 : vector<8x1xf32> -> vector<8x1xf32>
    %84 = vector.broadcast %83 : vector<8x1xf32> to vector<8x8xf32>
    %85 = arith.mulf %80, %84 : vector<8x8xf32>
    %cst_28 = arith.constant dense<0.000000e+00> : vector<8x8xf32>
    %86 = tpu.matmul %85, %71, %cst_28 {dimension_numbers = #tpu.dot_dimension_numbers<[1], [0], [0], [1], [0, 0, 1, 1], [], []>} : vector<8x8xf32>, vector<8x8xf32>, vector<8x8xf32> -> vector<8x8xf32>
    %c0_29 = arith.constant 0 : index
    %c24 = arith.constant 24 : index
    %87 = vector.load %arg6[%c0_29, %c24] : memref<16x32xf32, #tpu.memory_space<vmem>>, vector<8x8xf32>
    tpu.vector_store %arg6[%c0_29, %c24], %86 {strides = array<i32>} : memref<16x32xf32, #tpu.memory_space<vmem>>, vector<8x8xf32>,
    %c1 = arith.constant 1 : index
    %c0_30 = arith.constant 0 : index
    %c0_31 = arith.constant 0 : index
    %88 = vector.load %arg1[%c1, %c0_30, %c0_31] : memref<2x1x8xf32, #tpu.memory_space<vmem>>, vector<1x1x8xf32>
    %89 = vector.shape_cast %88 : vector<1x1x8xf32> to vector<1x8xf32>
    %90 = vector.shape_cast %89 : vector<1x8xf32> to vector<1x1x8xf32>
    %91 = vector.broadcast %90 : vector<1x1x8xf32> to vector<4x8x8xf32>
    %92 = arith.addf %6, %91 : vector<4x8x8xf32>
    %93 = vector.extract_strided_slice %3 {offsets = [8, 0], sizes = [8, 8], strides = [1, 1]} : vector<16x32xf32> to vector<8x8xf32>
    %94 = vector.extract_strided_slice %4 {offsets = [8, 0], sizes = [8, 8], strides = [1, 1]} : vector<16x32xf32> to vector<8x8xf32>
    %95 = vector.extract_strided_slice %5 {offsets = [8, 0], sizes = [8, 8], strides = [1, 1]} : vector<16x32xf32> to vector<8x8xf32>
    %cst_32 = arith.constant dense<0.000000e+00> : vector<8x8xf32>
    %96 = tpu.matmul %93, %94, %cst_32 {dimension_numbers = #tpu.dot_dimension_numbers<[1], [1], [0], [0], [0, 0, 1, 0], [], []>} : vector<8x8xf32>, vector<8x8xf32>, vector<8x8xf32> -> vector<8x8xf32>
    %97 = vector.extract_strided_slice %92 {offsets = [0, 0, 0], sizes = [1, 8, 8], strides = [1, 1, 1]} : vector<4x8x8xf32> to vector<1x8x8xf32>
    %98 = vector.shape_cast %97 : vector<1x8x8xf32> to vector<8x8xf32>
    %99 = arith.addf %96, %98 : vector<8x8xf32>
    %cst_33 = arith.constant dense<0xFF800000> : vector<8xf32>
    %100 = vector.multi_reduction <maximumf>, %99, %cst_33 [1] : vector<8x8xf32> to vector<8xf32>
    %101 = vector.shape_cast %100 : vector<8xf32> to vector<8x1xf32>
    %102 = vector.broadcast %101 : vector<8x1xf32> to vector<8x8xf32>
    %103 = arith.subf %99, %102 : vector<8x8xf32>
    %104 = math.exp %103 : vector<8x8xf32>
    %cst_34 = arith.constant dense<0.000000e+00> : vector<8xf32>
    %105 = vector.multi_reduction <add>, %104, %cst_34 [1] : vector<8x8xf32> to vector<8xf32>
    %106 = vector.shape_cast %105 : vector<8xf32> to vector<8x1xf32>
    %107 = tpu.reciprocal %106 : vector<8x1xf32> -> vector<8x1xf32>
    %108 = vector.broadcast %107 : vector<8x1xf32> to vector<8x8xf32>
    %109 = arith.mulf %104, %108 : vector<8x8xf32>
    %cst_35 = arith.constant dense<0.000000e+00> : vector<8x8xf32>
    %110 = tpu.matmul %109, %95, %cst_35 {dimension_numbers = #tpu.dot_dimension_numbers<[1], [0], [0], [1], [0, 0, 1, 1], [], []>} : vector<8x8xf32>, vector<8x8xf32>, vector<8x8xf32> -> vector<8x8xf32>
    %c8_36 = arith.constant 8 : index
    %c0_37 = arith.constant 0 : index
    %111 = vector.load %arg6[%c8_36, %c0_37] : memref<16x32xf32, #tpu.memory_space<vmem>>, vector<8x8xf32>
    tpu.vector_store %arg6[%c8_36, %c0_37], %110 {strides = array<i32>} : memref<16x32xf32, #tpu.memory_space<vmem>>, vector<8x8xf32>,
    %112 = vector.extract_strided_slice %3 {offsets = [8, 8], sizes = [8, 8], strides = [1, 1]} : vector<16x32xf32> to vector<8x8xf32>
    %113 = vector.extract_strided_slice %4 {offsets = [8, 8], sizes = [8, 8], strides = [1, 1]} : vector<16x32xf32> to vector<8x8xf32>
    %114 = vector.extract_strided_slice %5 {offsets = [8, 8], sizes = [8, 8], strides = [1, 1]} : vector<16x32xf32> to vector<8x8xf32>
    %cst_38 = arith.constant dense<0.000000e+00> : vector<8x8xf32>
    %115 = tpu.matmul %112, %113, %cst_38 {dimension_numbers = #tpu.dot_dimension_numbers<[1], [1], [0], [0], [0, 0, 1, 0], [], []>} : vector<8x8xf32>, vector<8x8xf32>, vector<8x8xf32> -> vector<8x8xf32>
    %116 = vector.extract_strided_slice %92 {offsets = [1, 0, 0], sizes = [1, 8, 8], strides = [1, 1, 1]} : vector<4x8x8xf32> to vector<1x8x8xf32>
    %117 = vector.shape_cast %116 : vector<1x8x8xf32> to vector<8x8xf32>
    %118 = arith.addf %115, %117 : vector<8x8xf32>
    %cst_39 = arith.constant dense<0xFF800000> : vector<8xf32>
    %119 = vector.multi_reduction <maximumf>, %118, %cst_39 [1] : vector<8x8xf32> to vector<8xf32>
    %120 = vector.shape_cast %119 : vector<8xf32> to vector<8x1xf32>
    %121 = vector.broadcast %120 : vector<8x1xf32> to vector<8x8xf32>
    %122 = arith.subf %118, %121 : vector<8x8xf32>
    %123 = math.exp %122 : vector<8x8xf32>
    %cst_40 = arith.constant dense<0.000000e+00> : vector<8xf32>
    %124 = vector.multi_reduction <add>, %123, %cst_40 [1] : vector<8x8xf32> to vector<8xf32>
    %125 = vector.shape_cast %124 : vector<8xf32> to vector<8x1xf32>
    %126 = tpu.reciprocal %125 : vector<8x1xf32> -> vector<8x1xf32>
    %127 = vector.broadcast %126 : vector<8x1xf32> to vector<8x8xf32>
    %128 = arith.mulf %123, %127 : vector<8x8xf32>
    %cst_41 = arith.constant dense<0.000000e+00> : vector<8x8xf32>
    %129 = tpu.matmul %128, %114, %cst_41 {dimension_numbers = #tpu.dot_dimension_numbers<[1], [0], [0], [1], [0, 0, 1, 1], [], []>} : vector<8x8xf32>, vector<8x8xf32>, vector<8x8xf32> -> vector<8x8xf32>
    %c8_42 = arith.constant 8 : index
    %c8_43 = arith.constant 8 : index
    %130 = vector.load %arg6[%c8_42, %c8_43] : memref<16x32xf32, #tpu.memory_space<vmem>>, vector<8x8xf32>
    tpu.vector_store %arg6[%c8_42, %c8_43], %129 {strides = array<i32>} : memref<16x32xf32, #tpu.memory_space<vmem>>, vector<8x8xf32>,
    %131 = vector.extract_strided_slice %3 {offsets = [8, 16], sizes = [8, 8], strides = [1, 1]} : vector<16x32xf32> to vector<8x8xf32>
    %132 = vector.extract_strided_slice %4 {offsets = [8, 16], sizes = [8, 8], strides = [1, 1]} : vector<16x32xf32> to vector<8x8xf32>
    %133 = vector.extract_strided_slice %5 {offsets = [8, 16], sizes = [8, 8], strides = [1, 1]} : vector<16x32xf32> to vector<8x8xf32>
    %cst_44 = arith.constant dense<0.000000e+00> : vector<8x8xf32>
    %134 = tpu.matmul %131, %132, %cst_44 {dimension_numbers = #tpu.dot_dimension_numbers<[1], [1], [0], [0], [0, 0, 1, 0], [], []>} : vector<8x8xf32>, vector<8x8xf32>, vector<8x8xf32> -> vector<8x8xf32>
    %135 = vector.extract_strided_slice %92 {offsets = [2, 0, 0], sizes = [1, 8, 8], strides = [1, 1, 1]} : vector<4x8x8xf32> to vector<1x8x8xf32>
    %136 = vector.shape_cast %135 : vector<1x8x8xf32> to vector<8x8xf32>
    %137 = arith.addf %134, %136 : vector<8x8xf32>
    %cst_45 = arith.constant dense<0xFF800000> : vector<8xf32>
    %138 = vector.multi_reduction <maximumf>, %137, %cst_45 [1] : vector<8x8xf32> to vector<8xf32>
    %139 = vector.shape_cast %138 : vector<8xf32> to vector<8x1xf32>
    %140 = vector.broadcast %139 : vector<8x1xf32> to vector<8x8xf32>
    %141 = arith.subf %137, %140 : vector<8x8xf32>
    %142 = math.exp %141 : vector<8x8xf32>
    %cst_46 = arith.constant dense<0.000000e+00> : vector<8xf32>
    %143 = vector.multi_reduction <add>, %142, %cst_46 [1] : vector<8x8xf32> to vector<8xf32>
    %144 = vector.shape_cast %143 : vector<8xf32> to vector<8x1xf32>
    %145 = tpu.reciprocal %144 : vector<8x1xf32> -> vector<8x1xf32>
    %146 = vector.broadcast %145 : vector<8x1xf32> to vector<8x8xf32>
    %147 = arith.mulf %142, %146 : vector<8x8xf32>
    %cst_47 = arith.constant dense<0.000000e+00> : vector<8x8xf32>
    %148 = tpu.matmul %147, %133, %cst_47 {dimension_numbers = #tpu.dot_dimension_numbers<[1], [0], [0], [1], [0, 0, 1, 1], [], []>} : vector<8x8xf32>, vector<8x8xf32>, vector<8x8xf32> -> vector<8x8xf32>
    %c8_48 = arith.constant 8 : index
    %c16_49 = arith.constant 16 : index
    %149 = vector.load %arg6[%c8_48, %c16_49] : memref<16x32xf32, #tpu.memory_space<vmem>>, vector<8x8xf32>
    tpu.vector_store %arg6[%c8_48, %c16_49], %148 {strides = array<i32>} : memref<16x32xf32, #tpu.memory_space<vmem>>, vector<8x8xf32>,
    %150 = vector.extract_strided_slice %3 {offsets = [8, 24], sizes = [8, 8], strides = [1, 1]} : vector<16x32xf32> to vector<8x8xf32>
    %151 = vector.extract_strided_slice %4 {offsets = [8, 24], sizes = [8, 8], strides = [1, 1]} : vector<16x32xf32> to vector<8x8xf32>
    %152 = vector.extract_strided_slice %5 {offsets = [8, 24], sizes = [8, 8], strides = [1, 1]} : vector<16x32xf32> to vector<8x8xf32>
    %cst_50 = arith.constant dense<0.000000e+00> : vector<8x8xf32>
    %153 = tpu.matmul %150, %151, %cst_50 {dimension_numbers = #tpu.dot_dimension_numbers<[1], [1], [0], [0], [0, 0, 1, 0], [], []>} : vector<8x8xf32>, vector<8x8xf32>, vector<8x8xf32> -> vector<8x8xf32>
    %154 = vector.extract_strided_slice %92 {offsets = [3, 0, 0], sizes = [1, 8, 8], strides = [1, 1, 1]} : vector<4x8x8xf32> to vector<1x8x8xf32>
    %155 = vector.shape_cast %154 : vector<1x8x8xf32> to vector<8x8xf32>
    %156 = arith.addf %153, %155 : vector<8x8xf32>
    %cst_51 = arith.constant dense<0xFF800000> : vector<8xf32>
    %157 = vector.multi_reduction <maximumf>, %156, %cst_51 [1] : vector<8x8xf32> to vector<8xf32>
    %158 = vector.shape_cast %157 : vector<8xf32> to vector<8x1xf32>
    %159 = vector.broadcast %158 : vector<8x1xf32> to vector<8x8xf32>
    %160 = arith.subf %156, %159 : vector<8x8xf32>
    %161 = math.exp %160 : vector<8x8xf32>
    %cst_52 = arith.constant dense<0.000000e+00> : vector<8xf32>
    %162 = vector.multi_reduction <add>, %161, %cst_52 [1] : vector<8x8xf32> to vector<8xf32>
    %163 = vector.shape_cast %162 : vector<8xf32> to vector<8x1xf32>
    %164 = tpu.reciprocal %163 : vector<8x1xf32> -> vector<8x1xf32>
    %165 = vector.broadcast %164 : vector<8x1xf32> to vector<8x8xf32>
    %166 = arith.mulf %161, %165 : vector<8x8xf32>
    %cst_53 = arith.constant dense<0.000000e+00> : vector<8x8xf32>
    %167 = tpu.matmul %166, %152, %cst_53 {dimension_numbers = #tpu.dot_dimension_numbers<[1], [0], [0], [1], [0, 0, 1, 1], [], []>} : vector<8x8xf32>, vector<8x8xf32>, vector<8x8xf32> -> vector<8x8xf32>
    %c8_54 = arith.constant 8 : index
    %c24_55 = arith.constant 24 : index
    %168 = vector.load %arg6[%c8_54, %c24_55] : memref<16x32xf32, #tpu.memory_space<vmem>>, vector<8x8xf32>
    tpu.vector_store %arg6[%c8_54, %c24_55], %167 {strides = array<i32>} : memref<16x32xf32, #tpu.memory_space<vmem>>, vector<8x8xf32>,
    %c0_56 = arith.constant 0 : index
    %c0_57 = arith.constant 0 : index
    %169 = vector.load %arg6[%c0_56, %c0_57] : memref<16x32xf32, #tpu.memory_space<vmem>>, vector<16x32xf32>
    %c0_58 = arith.constant 0 : index
    %c0_59 = arith.constant 0 : index
    %170 = vector.load %arg4[%c0_58, %c0_59] : memref<32x32xf32, #tpu.memory_space<vmem>>, vector<32x32xf32>
    %cst_60 = arith.constant dense<0.000000e+00> : vector<16x32xf32>
    %171 = tpu.matmul %169, %170, %cst_60 {dimension_numbers = #tpu.dot_dimension_numbers<[1], [0], [0], [1], [0, 0, 1, 1], [], []>} : vector<16x32xf32>, vector<32x32xf32>, vector<16x32xf32> -> vector<16x32xf32>
    %172 = arith.addf %0, %171 : vector<16x32xf32>
    %c0_61 = arith.constant 0 : index
    %c0_62 = arith.constant 0 : index
    %173 = vector.load %arg5[%c0_61, %c0_62] : memref<16x32xf32, #tpu.memory_space<vmem>>, vector<16x32xf32>
    tpu.vector_store %arg5[%c0_61, %c0_62], %172 {strides = array<i32>} : memref<16x32xf32, #tpu.memory_space<vmem>>, vector<16x32xf32>,
    return
  }
}

</mosaic_0001>

<bundles_post_ra>
// kernel: tpu_custom_call.1
= control target key start
LH: loop header
LB: loop body
LE: loop exit
PB: predicated region body
PF: predicated region fallthrough
CT: control target
= control target key end

     0   :  { %10 = vsyncpa [#allocation4], 0  ;;  %s2317_s0 = inlined_call_operand.hbm [shape: f32[16,32], index: 0, kind: input, shape index: {}]   ;;  %s2318_s1 = inlined_call_operand.hbm [shape: f32[2,1,8], index: 1, kind: input, shape index: {}]   ;;  %s2319_s2 = inlined_call_operand.hbm [shape: f32[4,8,8], index: 2, kind: input, shape index: {}]   ;;  %s2320_s3 = inlined_call_operand.hbm [shape: f32[32,96], index: 3, kind: input, shape index: {}]   ;;  %s2321_s4 = inlined_call_operand.hbm [shape: f32[32,32], index: 4, kind: input, shape index: {}]   ;;  %s2322_s5 = inlined_call_operand.hbm [shape: f32[16,32], index: 5, kind: output, shape index: {}]  }
   0x1   :  { %11 = vsyncpa [#allocation7], 0 }
   0x2   :  { %12 = vsyncpa [#allocation10], 0 }
   0x3   :  { %13 = vsyncpa [#allocation5], 0  ;;  %s2028_s18 = smov [#allocation6]  }
   0x4   :  { %s31_s19 = sshll.u32 %s2028_s18, 4  ;;  %s32_s19 = int_to_ptr.vmem [resolvable:$true] %s31_s19 }
   0x5   :  { %s1908_s20 = scalar_lea.vmem %s32_s19, 32  ;;  %p1913_p1 = scmp.lt.s32.totalorder %s32_s19, %s32_s19 }
   0x6   :  { %p1909_p0 = scmp.ne.s32.totalorder %s32_s19, %s1908_s20  ;;  %p1914_p2 = scmp.lt.s32.totalorder %s1908_s20, %s1908_s20 }
   0x8   :  { %p1915_p3 = por %p1914_p2, %p1913_p1 }
   0xa   :  { %p1916_p4 = pnand %p1915_p3, %p1909_p0 }
   0xc   :  { %1919 = shalt.err (!%p1916_p4)
}
   0xd   :  { %s2029_s21 = smov 16   ;;  %s2030_s22 = smov 1  }
   0xe   :  { %37 = dma.hbm_to_vmem [thread:$0]  %s2318_s1, 32, %s32_s19, [#allocation7], %s2029_s21, %s2029_s21, %s2030_s22  }
   0xf   :  { %s2031_s25 = smov [#allocation9]   ;;  %s2032_s27 = smov [#allocation3]  }
  0x10   :  { %s55_s26 = sshll.u32 %s2031_s25, 4  ;;  %s19_s28 = sshll.u32 %s2032_s27, 4  ;;  %s56_s26 = int_to_ptr.vmem [resolvable:$true] %s55_s26  ;;  %s20_s28 = int_to_ptr.vmem [resolvable:$true] %s19_s28 }
  0x11   :  { %s1928_s29 = scalar_lea.vmem %s56_s26, 512  ;;  %p1933_p6 = scmp.lt.s32.totalorder %s56_s26, %s56_s26 }
  0x12   :  { %p1929_p5 = scmp.ne.s32.totalorder %s56_s26, %s1928_s29  ;;  %p1934_p7 = scmp.lt.s32.totalorder %s1928_s29, %s1928_s29 }
  0x14   :  { %p1935_p8 = por %p1934_p7, %p1933_p6 }
  0x16   :  { %p1936_p9 = pnand %p1935_p8, %p1929_p5 }
  0x18   :  { %1939 = shalt.err (!%p1936_p9)
}
  0x19   :  { %s2033_s30 = smov 128   ;;  %s2034_s6 = smov 8  }
  0x1a   :  { %61 = dma.hbm_to_vmem [thread:$0]  %s2320_s3, 512, %s56_s26, [#allocation10], %s2033_s30, %s2033_s30, %s2034_s6  }
  0x1b   :  { %s1948_s1 = scalar_lea.vmem %s20_s28, 256  ;;  %p1953_p11 = scmp.lt.s32.totalorder %s20_s28, %s20_s28 }
  0x1c   :  { %p1949_p10 = scmp.ne.s32.totalorder %s20_s28, %s1948_s1  ;;  %p1954_p12 = scmp.lt.s32.totalorder %s1948_s1, %s1948_s1 }
  0x1e   :  { %p1955_p13 = por %p1954_p12, %p1953_p11 }
  0x20   :  { %p1956_p0 = pnand %p1955_p13, %p1949_p10 }
  0x22   :  { %1959 = shalt.err (!%p1956_p0)
}
  0x23   :  { %25 = dma.hbm_to_vmem [thread:$0]  %s2317_s0, 256, %s20_s28, [#allocation4], %s2033_s30, %s2033_s30, %s2034_s6  }
  0x24   :  { %s2035_s11 = smov [#allocation8]   ;;  %s2036_s13 = smov [#allocation11]  }
  0x25   :  { %s43_s12 = sshll.u32 %s2035_s11, 4  ;;  %s67_s3 = sshll.u32 %s2036_s13, 4  ;;  %s44_s12 = int_to_ptr.vmem [resolvable:$true] %s43_s12  ;;  %s68_s3 = int_to_ptr.vmem [resolvable:$true] %s67_s3 }
  0x26   :  { %s1968_s14 = scalar_lea.vmem %s44_s12, 512  ;;  %p1973_p2 = scmp.lt.s32.totalorder %s44_s12, %s44_s12 }
  0x27   :  { %p1969_p1 = scmp.ne.s32.totalorder %s44_s12, %s1968_s14  ;;  %p1974_p3 = scmp.lt.s32.totalorder %s1968_s14, %s1968_s14 }
  0x29   :  { %p1975_p4 = por %p1974_p3, %p1973_p2 }
  0x2b   :  { %p1976_p5 = pnand %p1975_p4, %p1969_p1 }
  0x2d   :  { %1979 = shalt.err (!%p1976_p5)
}
  0x2e   :  { %49 = dma.hbm_to_vmem [thread:$0]  %s2319_s2, 512, %s44_s12, [#allocation7], %s2033_s30, %s2033_s30, %s2034_s6  }
  0x2f   :  { %s1988_s0 = scalar_lea.vmem %s68_s3, 512  ;;  %p1993_p7 = scmp.lt.s32.totalorder %s68_s3, %s68_s3 }
  0x30   :  { %p1989_p6 = scmp.ne.s32.totalorder %s68_s3, %s1988_s0  ;;  %p1994_p8 = scmp.lt.s32.totalorder %s1988_s0, %s1988_s0 }
  0x32   :  { %p1995_p9 = por %p1994_p8, %p1993_p7 }
  0x34   :  { %p1996_p10 = pnand %p1995_p9, %p1989_p6 }
  0x36   :  { %1999 = shalt.err (!%p1996_p10)
}
  0x37   :  { %73 = dma.hbm_to_vmem [thread:$0]  %s2321_s4, 512, %s68_s3, [#allocation10], %s2033_s30, %s2033_s30, %s2034_s6  }
  0x38   :  { %2020 = dma.done.wait [#allocation4], 256  }
  0x39   :  { %2021 = vsyncadd [#allocation4], 4294967040 }
  0x3a   :  { %2022 = dma.done.wait [#allocation7], 544  }
  0x3b   :  { %2023 = vsyncadd [#allocation7], 4294966752 }
  0x3c   :  { %2024 = dma.done.wait [#allocation10], 1024  }
  0x3d   :  { %2025 = vsyncadd [#allocation10], 4294966272  ;;  %vm95_vm0 = vcmask 261120   ;;  %v94_v0 = vld [vmem:[#allocation9 + $0x18] sm:$0xff]  ;;  %v93_v1 = vld [vmem:[#allocation9 + $0x10] sm:$0xff]  ;;  %v2037_v6 = vmov 0.0  }
  0x3e   :  { %1742 = vmatprep.subr.mxu0 %v94_v0  ;;  %v2111_v2 = vld [vmem:[#allocation3] sm:$0xff]  ;;  %v91_v4 = vld [vmem:[#allocation9] sm:$0xff]  ;;  %v2115_v5 = vld [vmem:[#allocation3 + $0x8] sm:$0xff]  ;;  %1753 = vmatprep.subr.mxu1 %v2037_v6  ;;  %vm2038_vm1 = vmmov 0   ;;  %s2039_s2 = smov 64   ;;  %s2040_s4 = smov 96  }
  0x3f   :  { %1743 = vmatpush3.msra.mxu0 %v94_v0  ;;  %v92_v3 = vld [vmem:[#allocation9 + $0x8] sm:$0xff]  ;;  %1750 = vmatprep.mubr.msk.f32.mxu0 %vm95_vm0, %v2111_v2  ;;  %s2041_s19 = smov 88   ;;  %s2042_s20 = smov 120   ;;  %vm195_vm2 = vcmask 64512   ;;  %v2157_v15 = vld [vmem:[#allocation8] sm:$0xff]  ;;  %v2168_v24 = vld [vmem:[#allocation8 + $0x10] sm:$0xff] }
  0x40   :  { %1744 = vmatprep.subr.mxu0 %v93_v1  ;;  %1755 = vmatprep.mubr.msk.f32.mxu1 %vm2038_vm1, %v2037_v6  ;;  %s2043_s22 = smov 80   ;;  %s2044_s23 = smov 112   ;;  %v2159_v16 = vld [vmem:[#allocation6] ss:$0 sm:$0xff]  ;;  %v178_v53 = vld [vmem:[#allocation8 + $0x8] sm:$0xff]  ;;  %vm527_vm3 = vcmask 130112  }
  0x41   :  { %1745 = vmatpush3.msra.mxu0 %v93_v1  ;;  %v188_v17 = vadd.f32 %v2159_v16, %v2157_v15  ;;  %s2045_s24 = smov 72   ;;  %s2046_s25 = smov 104   ;;  %v190_v25 = vadd.f32 %v2159_v16, %v2168_v24  ;;  %v180_v45 = vld [vmem:[#allocation8 + $0x18] sm:$0xff]  ;;  %v189_v62 = vadd.f32 %v2159_v16, %v178_v53  ;;  %vm698_vm4 = vcmask 195712  }
  0x42   :  { %1746 = vmatprep.subr.mxu0 %v92_v3  ;;  %v191_v46 = vadd.f32 %v2159_v16, %v180_v45  ;;  %v1683_v55 = vld [vmem:[#allocation6 + $0x1] ss:$0 sm:$0xff]  ;;  %s2047_s26 = smov 48   ;;  %s2048_s27 = smov 56   ;;  %vm869_vm5 = vcmask 261312  }
  0x43   :  { %1747 = vmatpush3.msra.mxu0 %v92_v3  ;;  %v880_v57 = vadd.f32 %v1683_v55, %v178_v53  ;;  %v879_v1 = vadd.f32 %v1683_v55, %v2157_v15  ;;  %v882_v16 = vadd.f32 %v1683_v55, %v180_v45  ;;  %s2049_s28 = smov 40   ;;  %s2050_s29 = smov 24  }
  0x44   :  { %1748 = vmatprep.subr.mxu0 %v91_v4 }
  0x45   :  { %1749 = vmatpush3.msra.mxu0 %v91_v4 }
  0x46   :  { %1751 = vmatmul.mubr.msk.f32.vlgmr.msra.gmra.mxu0 %vm95_vm0, %v2115_v5  ;;  %1773 = vmatprep.subr.mxu0 %v2037_v6 }
  0x47   :  { %1775 = vmatprep.mubr.msk.f32.mxu0 %vm2038_vm1, %v2037_v6 }
 0x106   :  { %v2125_v7 = vpop.f32.mrf.mxu0 }
 0x108   :  { %v2127_v8 = vpop.f32.mrf.mxu0 }
 0x109   :  { %281 = vrot.lane.b32.xlu1 %v2127_v8, %s2039_s2  ;;  %193 = vrot.lane.b32.xlu0 %v2127_v8, %s2040_s4 }
 0x10d   :  { %360 = vrot.lane.b32.xlu1 %v2127_v8, %s2041_s19 }
 0x111   :  { %358 = vrot.lane.b32.xlu1 %v2127_v8, %s2042_s20 }
 0x115   :  { %531 = vrot.lane.b32.xlu1 %v2127_v8, %s2043_s22 }
 0x119   :  { %529 = vrot.lane.b32.xlu1 %v2127_v8, %s2044_s23 }
 0x17b   :  { %v282_v9 = vpop.permute.xlu1 %281  ;;  %v194_v10 = vpop.permute.xlu0 %193 }
 0x17c   :  { %1754 = vmatpush3.xpose.msk.msra.mxu1 %vm195_vm2, %v194_v10 }
 0x17d   :  { %1758 = vmatprep.subr.mxu1 %v2037_v6 }
 0x17f   :  { %v2143_v11 = vpop.permute.xlu1 %360  ;;  %1756 = vmatmul.mubr.msk.f32.vlgmr.msra.gmra.mxu1 %vm195_vm2, %v2127_v8 }
 0x180   :  { %1759 = vmatpush3.msra.mxu1 %v282_v9  ;;  %1760 = vmatprep.mubr.msk.f32.mxu1 %vm2038_vm1, %v2037_v6 }
 0x181   :  { %1763 = vmatprep.subr.mxu1 %v2037_v6 }
 0x183   :  { %v2150_v12 = vpop.permute.xlu1 %358 }
 0x187   :  { %v532_v13 = vpop.permute.xlu1 %531 }
 0x188   :  { %1774 = vmatpush3.xpose.msk.msra.mxu0 %vm195_vm2, %v532_v13 }
 0x189   :  { %1783 = vmatprep.subr.mxu0 %v2037_v6 }
 0x18b   :  { %v530_v14 = vpop.permute.xlu1 %529 }
 0x18c   :  { %1776 = vmatmul.mubr.msk.f32.vlgmr.msra.gmra.mxu0 %vm195_vm2, %v530_v14 }
 0x18d   :  { %1785 = vmatprep.mubr.msk.f32.mxu0 %vm2038_vm1, %v2037_v6 }
 0x23f   :  { %v266_v18 = vpop.f32.mrf.mxu1 }
 0x240   :  { %v267_v19 = vadd.f32 %v266_v18, %v188_v17 }
 0x241   :  { %v1757_v20 = vpop.f32.mrf.mxu1 }
 0x242   :  { %v270_v21 = vsel %vm195_vm2, %v267_v19, -inf }
 0x243   :  { %271 = vmax.xlane.f32.xlu0 %v270_v21 }
 0x24c   :  { %v603_v22 = vpop.f32.mrf.mxu0 }
 0x24d   :  { %v2172_v26 = vadd.f32 %v603_v22, %v190_v25 }
 0x24e   :  { %v1777_v23 = vpop.f32.mrf.mxu0 }
 0x24f   :  { %v607_v27 = vsel %vm195_vm2, %v2172_v26, -inf }
 0x259   :  { %702 = vrot.lane.b32.xlu0 %v2127_v8, %s2045_s24 }
 0x25d   :  { %1218 = vrot.lane.b32.xlu0 %v2125_v7, %s2044_s23 }
 0x261   :  { %1388 = vrot.lane.b32.xlu0 %v2125_v7, %s2046_s25 }
 0x280   :  { %608 = vmax.xlane.f32.xlu0 %v607_v27 }
 0x2cc   :  { %v272_v28 = vpop.xlane.xlu0 %271 }
 0x2cd   :  { %v273_v29 = vsub.f32 %v267_v19, %v272_v28 }
 0x2cf   :  { %v274_v30 = vmul.f32 1.442695, %v273_v29 }
 0x2d0   :  { %v703_v31 = vpop.permute.xlu0 %702 }
 0x2d1   :  { %1868 = vpow2.f32 %v274_v30  ;;  %1784 = vmatpush3.xpose.msk.msra.mxu0 %vm195_vm2, %v703_v31 }
 0x2d2   :  { %1793 = vmatprep.subr.mxu0 %v2037_v6 }
 0x2d4   :  { %v1219_v42 = vpop.permute.xlu0 %1218 }
 0x2d8   :  { %v1389_v44 = vpop.permute.xlu0 %1388 }
 0x2de   :  { %v1869_v32 = vpop.eup %1868 }
 0x2df   :  { %v276_v33 = vsel %vm195_vm2, %v1869_v32, 0.0 }
 0x2e0   :  { %277 = vadd.xlane.f32.xlu1 %v276_v33 }
 0x2f1   :  { %700 = vrot.lane.b32.xlu1 %v2127_v8, %s2046_s25 }
 0x2f5   :  { %884 = vrot.lane.b32.xlu1 %v2125_v7, %s2040_s4 }
 0x2f9   :  { %1050 = vrot.lane.b32.xlu1 %v2125_v7, %s2041_s19 }
 0x2fd   :  { %1048 = vrot.lane.b32.xlu1 %v2125_v7, %s2042_s20 }
 0x301   :  { %1220 = vrot.lane.b32.xlu1 %v2125_v7, %s2043_s22 }
 0x305   :  { %1390 = vrot.lane.b32.xlu1 %v2125_v7, %s2045_s24 }
 0x309   :  { %v609_v50 = vpop.xlane.xlu0 %608 }
 0x30a   :  { %v610_v52 = vsub.f32 %v2172_v26, %v609_v50 }
 0x30c   :  { %v611_v58 = vmul.f32 1.442695, %v610_v52 }
 0x369   :  { %v278_v34 = vpop.xlane.xlu1 %277 }
 0x36a   :  { %1870 = vrcp.f32 %v278_v34 }
 0x36b   :  { %1872 = vpow2.f32 %v611_v58 }
 0x36d   :  { %v701_v35 = vpop.permute.xlu1 %700 }
 0x36e   :  { %1786 = vmatmul.mubr.msk.f32.vlgmr.msra.gmra.mxu0 %vm195_vm2, %v701_v35 }
 0x36f   :  { %1795 = vmatprep.mubr.msk.f32.mxu0 %vm2038_vm1, %v2037_v6 }
 0x371   :  { %v885_v36 = vpop.permute.xlu1 %884 }
 0x372   :  { %1794 = vmatpush3.xpose.msk.msra.mxu0 %vm195_vm2, %v885_v36 }
 0x373   :  { %1803 = vmatprep.subr.mxu0 %v2037_v6 }
 0x375   :  { %v1051_v37 = vpop.permute.xlu1 %1050  ;;  %1796 = vmatmul.mubr.msk.f32.vlgmr.msra.gmra.mxu0 %vm195_vm2, %v2125_v7 }
 0x376   :  { %1804 = vmatpush3.xpose.msk.msra.mxu0 %vm195_vm2, %v1051_v37  ;;  %1805 = vmatprep.mubr.msk.f32.mxu0 %vm2038_vm1, %v2037_v6 }
 0x377   :  { %v1871_v38 = vpop.eup %1870  ;;  %1813 = vmatprep.subr.mxu0 %v2037_v6 }
 0x378   :  { %v280_v39 = vmul.f32 %v1871_v38, %v1869_v32  ;;  %v2234_v23 = vpop.eup %1872 }
 0x379   :  { %v1049_v40 = vpop.permute.xlu1 %1048  ;;  %v613_v25 = vsel %vm195_vm2, %v2234_v23, 0.0 }
 0x37a   :  { %1761 = vmatmul.mubr.msk.f32.vlgmr.msra.gmra.mxu1 %vm195_vm2, %v280_v39  ;;  %1806 = vmatmul.mubr.msk.f32.vlgmr.msra.gmra.mxu0 %vm195_vm2, %v1049_v40 }
 0x37b   :  { %1764 = vmatpush3.xpose.msk.msra.mxu1 %vm195_vm2, %v2143_v11  ;;  %1765 = vmatprep.mubr.msk.f32.mxu1 %vm2038_vm1, %v2037_v6 }
 0x37c   :  { %1815 = vmatprep.mubr.msk.f32.mxu0 %vm2038_vm1, %v2037_v6  ;;  %1768 = vmatprep.subr.mxu1 %v2037_v6 }
 0x37d   :  { %v1221_v41 = vpop.permute.xlu1 %1220 }
 0x37e   :  { %1766 = vmatmul.mubr.msk.f32.vlgmr.msra.gmra.mxu1 %vm195_vm2, %v2150_v12  ;;  %1814 = vmatpush3.xpose.msk.msra.mxu0 %vm195_vm2, %v1221_v41  ;;  %v881_v12 = vadd.f32 %v1683_v55, %v2168_v24 }
 0x37f   :  { %1823 = vmatprep.subr.mxu0 %v2037_v6  ;;  %1770 = vmatprep.mubr.msk.f32.mxu1 %vm2038_vm1, %v2037_v6 }
 0x381   :  { %v1391_v43 = vpop.permute.xlu1 %1390  ;;  %1816 = vmatmul.mubr.msk.f32.vlgmr.msra.gmra.mxu0 %vm195_vm2, %v1219_v42 }
 0x382   :  { %1824 = vmatpush3.xpose.msk.msra.mxu0 %vm195_vm2, %v1391_v43  ;;  %1825 = vmatprep.mubr.msk.f32.mxu0 %vm2038_vm1, %v2037_v6 }
 0x385   :  { %1826 = vmatmul.mubr.msk.f32.vlgmr.msra.gmra.mxu0 %vm195_vm2, %v1389_v44 }
 0x42e   :  { %v774_v47 = vpop.f32.mrf.mxu0 }
 0x42f   :  { %v775_v48 = vadd.f32 %v774_v47, %v191_v46 }
 0x430   :  { %v1787_v49 = vpop.f32.mrf.mxu0 }
 0x431   :  { %v778_v51 = vsel %vm195_vm2, %v775_v48, -inf }
 0x432   :  { %779 = vmax.xlane.f32.xlu0 %v778_v51 }
 0x435   :  { %v956_v54 = vpop.f32.mrf.mxu0 }
 0x436   :  { %v957_v11 = vadd.f32 %v956_v54, %v879_v1 }
 0x437   :  { %v1797_v56 = vpop.f32.mrf.mxu0 }
 0x438   :  { %v960_v15 = vsel %vm195_vm2, %v957_v11, -inf }
 0x43a   :  { %v353_v59 = vpop.f32.mrf.mxu1  ;;  %v1122_v60 = vpop.f32.mrf.mxu0 }
 0x43b   :  { %357 = vst.msk [vmem:[#allocation2] sm:$0xff] %vm195_vm2, %v353_v59  ;;  %v1123_v61 = vadd.f32 %v1122_v60, %v880_v57 }
 0x43c   :  { %v1762_v63 = vpop.f32.mrf.mxu1  ;;  %v1807_v0 = vpop.f32.mrf.mxu0 }
 0x43d   :  { %v1126_v3 = vsel %vm195_vm2, %v1123_v61, -inf }
 0x43e   :  { %1127 = vmax.xlane.f32.xlu0 %v1126_v3  ;;  %v432_v4 = vpop.f32.mrf.mxu1 }
 0x43f   :  { %v2227_v9 = vadd.f32 %v432_v4, %v189_v62 }
 0x440   :  { %v1767_v10 = vpop.f32.mrf.mxu1 }
 0x441   :  { %v1292_v13 = vpop.f32.mrf.mxu0  ;;  %v436_v14 = vsel %vm195_vm2, %v2227_v9, -inf }
 0x442   :  { %437 = vmax.xlane.f32.xlu1 %v436_v14  ;;  %v1293_v18 = vadd.f32 %v1292_v13, %v881_v12 }
 0x443   :  { %v1817_v17 = vpop.f32.mrf.mxu0 }
 0x444   :  { %v1296_v24 = vsel %vm195_vm2, %v1293_v18, -inf }
 0x445   :  { %v1462_v19 = vpop.f32.mrf.mxu0 }
 0x446   :  { %v1463_v20 = vadd.f32 %v1462_v19, %v882_v16  ;;  %961 = vmax.xlane.f32.xlu1 %v960_v15 }
 0x447   :  { %v1827_v21 = vpop.f32.mrf.mxu0 }
 0x448   :  { %v1466_v22 = vsel %vm195_vm2, %v1463_v20, -inf }
 0x449   :  { %1467 = vmax.xlane.f32.xlu0 %v1466_v22 }
 0x44a   :  { %1297 = vmax.xlane.f32.xlu1 %v1296_v24 }
 0x44d   :  { %614 = vadd.xlane.f32.xlu0 %v613_v25 }
 0x4bb   :  { %v780_v26 = vpop.xlane.xlu0 %779 }
 0x4bc   :  { %v781_v27 = vsub.f32 %v775_v48, %v780_v26 }
 0x4be   :  { %v782_v28 = vmul.f32 1.442695, %v781_v27 }
 0x4c0   :  { %1874 = vpow2.f32 %v782_v28 }
 0x4c7   :  { %v1128_v29 = vpop.xlane.xlu0 %1127 }
 0x4c8   :  { %v1129_v30 = vsub.f32 %v1123_v61, %v1128_v29 }
 0x4ca   :  { %v1130_v31 = vmul.f32 1.442695, %v1129_v30  ;;  %v1563_v30 = vld [vmem:[#allocation11 + $0x18] sm:$0xff] }
 0x4cb   :  { %v438_v32 = vpop.xlane.xlu1 %437  ;;  %1833 = vmatprep.subr.mxu0 %v1563_v30 }
 0x4cc   :  { %1876 = vpow2.f32 %v1130_v31  ;;  %v439_v52 = vsub.f32 %v2227_v9, %v438_v32  ;;  %v1562_v31 = vld [vmem:[#allocation11 + $0x10] sm:$0xff]  ;;  %1834 = vmatpush3.msra.mxu0 %v1563_v30  ;;  %v1561_v32 = vld [vmem:[#allocation11 + $0x8] sm:$0xff] }
 0x4cd   :  { %v2239_v33 = vpop.eup %1874  ;;  %1835 = vmatprep.subr.mxu0 %v1562_v31 }
 0x4ce   :  { %v784_v34 = vsel %vm195_vm2, %v2239_v33, 0.0  ;;  %v440_v53 = vmul.f32 1.442695, %v439_v52  ;;  %1836 = vmatpush3.msra.mxu0 %v1562_v31 }
 0x4cf   :  { %785 = vadd.xlane.f32.xlu1 %v784_v34  ;;  %v962_v35 = vpop.xlane.xlu1 %961  ;;  %v1560_v34 = vld [vmem:[#allocation11] sm:$0xff]  ;;  %1837 = vmatprep.subr.mxu0 %v1561_v32 }
 0x4d0   :  { %v963_v36 = vsub.f32 %v957_v11, %v962_v35  ;;  %1838 = vmatpush3.msra.mxu0 %v1561_v32 }
 0x4d1   :  { %1839 = vmatprep.subr.mxu0 %v1560_v34 }
 0x4d2   :  { %v964_v37 = vmul.f32 1.442695, %v963_v36  ;;  %v1468_v38 = vpop.xlane.xlu0 %1467  ;;  %1840 = vmatpush3.msra.mxu0 %v1560_v34 }
 0x4d3   :  { %v1469_v39 = vsub.f32 %v1463_v20, %v1468_v38  ;;  %v1298_v40 = vpop.xlane.xlu1 %1297 }
 0x4d4   :  { %1878 = vpow2.f32 %v964_v37  ;;  %v1299_v41 = vsub.f32 %v1293_v18, %v1298_v40 }
 0x4d5   :  { %v1470_v42 = vmul.f32 1.442695, %v1469_v39 }
 0x4d6   :  { %v1300_v43 = vmul.f32 1.442695, %v1299_v41  ;;  %v615_v56 = vpop.xlane.xlu0 %614 }
 0x4d7   :  { %1880 = vpow2.f32 %v1470_v42 }
 0x4d8   :  { %1882 = vpow2.f32 %v1300_v43 }
 0x4d9   :  { %v2243_v44 = vpop.eup %1876  ;;  %1884 = vpow2.f32 %v440_v53 }
 0x4da   :  { %v1132_v45 = vsel %vm195_vm2, %v2243_v44, 0.0 }
 0x4db   :  { %1133 = vadd.xlane.f32.xlu1 %v1132_v45 }
 0x4e1   :  { %v2247_v46 = vpop.eup %1878 }
 0x4e2   :  { %v966_v47 = vsel %vm195_vm2, %v2247_v46, 0.0 }
 0x4e3   :  { %967 = vadd.xlane.f32.xlu0 %v966_v47 }
 0x4e4   :  { %v2251_v48 = vpop.eup %1880 }
 0x4e5   :  { %v2253_v49 = vpop.eup %1882  ;;  %v1472_v50 = vsel %vm195_vm2, %v2251_v48, 0.0 }
 0x4e6   :  { %1473 = vadd.xlane.f32.xlu1 %v1472_v50  ;;  %v1302_v51 = vsel %vm195_vm2, %v2253_v49, 0.0  ;;  %v1885_v54 = vpop.eup %1884 }
 0x4e7   :  { %1303 = vadd.xlane.f32.xlu0 %v1302_v51  ;;  %v442_v55 = vsel %vm195_vm2, %v1885_v54, 0.0 }
 0x4f7   :  { %618 = vrot.lane.b32.xlu1 %v2127_v8, %s2047_s26 }
 0x4fd   :  { %447 = vrot.lane.b32.xlu0 %v2127_v8, %s2048_s27 }
 0x501   :  { %971 = vrot.lane.b32.xlu0 %v2125_v7, %s2039_s2 }
 0x505   :  { %1307 = vrot.lane.b32.xlu0 %v2125_v7, %s2047_s26 }
 0x51b   :  { %443 = vadd.xlane.f32.xlu1 %v442_v55 }
 0x52c   :  { %789 = vrot.lane.b32.xlu1 %v2127_v8, %s2049_s28 }
 0x530   :  { %1137 = vrot.lane.b32.xlu1 %v2125_v7, %s2048_s27 }
 0x534   :  { %1477 = vrot.lane.b32.xlu1 %v2125_v7, %s2049_s28 }
 0x558   :  { %v786_v60 = vpop.xlane.xlu1 %785 }
 0x564   :  { %v1134_v61 = vpop.xlane.xlu1 %1133 }
 0x56c   :  { %v968_v57 = vpop.xlane.xlu0 %967 }
 0x56f   :  { %v1474_v62 = vpop.xlane.xlu1 %1473 }
 0x570   :  { %v1304_v58 = vpop.xlane.xlu0 %1303 }
 0x573   :  { %v619_v63 = vpop.permute.xlu1 %618 }
 0x574   :  { %v448_v59 = vpop.permute.xlu0 %447 }
 0x575   :  { %1769 = vmatpush3.msra.mxu1 %v448_v59 }
 0x576   :  { %1778 = vmatprep.subr.mxu1 %v2037_v6 }
 0x578   :  { %v972_v12 = vpop.permute.xlu0 %971 }
 0x57c   :  { %v1308_v19 = vpop.permute.xlu0 %1307 }
 0x5a4   :  { %v444_v0 = vpop.xlane.xlu1 %443 }
 0x5a5   :  { %1886 = vrcp.f32 %v444_v0 }
 0x5a6   :  { %1888 = vrcp.f32 %v615_v56 }
 0x5a7   :  { %1890 = vrcp.f32 %v786_v60 }
 0x5a8   :  { %1892 = vrcp.f32 %v968_v57  ;;  %v790_v9 = vpop.permute.xlu1 %789 }
 0x5a9   :  { %1894 = vrcp.f32 %v1134_v61 }
 0x5aa   :  { %1896 = vrcp.f32 %v1304_v58 }
 0x5ab   :  { %1898 = vrcp.f32 %v1474_v62 }
 0x5ac   :  { %v1138_v16 = vpop.permute.xlu1 %1137 }
 0x5b0   :  { %v1478_v21 = vpop.permute.xlu1 %1477 }
 0x5b2   :  { %v1887_v8 = vpop.eup %1886 }
 0x5b3   :  { %v446_v1 = vmul.f32 %v1887_v8, %v1885_v54  ;;  %v1889_v7 = vpop.eup %1888 }
 0x5b4   :  { %v617_v3 = vmul.f32 %v1889_v7, %v2234_v23  ;;  %v1891_v4 = vpop.eup %1890 }
 0x5b5   :  { %1771 = vmatmul.mubr.msk.f32.vlgmr.msra.gmra.mxu1 %vm195_vm2, %v446_v1  ;;  %v788_v10 = vmul.f32 %v1891_v4, %v2239_v33  ;;  %v1893_v11 = vpop.eup %1892 }
 0x5b6   :  { %1779 = vmatpush3.msra.mxu1 %v619_v63  ;;  %1780 = vmatprep.mubr.msk.f32.mxu1 %vm2038_vm1, %v2037_v6  ;;  %v970_v13 = vmul.f32 %v1893_v11, %v2247_v46  ;;  %v1895_v14 = vpop.eup %1894 }
 0x5b7   :  { %1788 = vmatprep.subr.mxu1 %v2037_v6  ;;  %v1136_v17 = vmul.f32 %v1895_v14, %v2243_v44  ;;  %v1897_v18 = vpop.eup %1896 }
 0x5b8   :  { %v1306_v15 = vmul.f32 %v1897_v18, %v2253_v49  ;;  %v1899_v20 = vpop.eup %1898 }
 0x5b9   :  { %1781 = vmatmul.mubr.msk.f32.vlgmr.msra.gmra.mxu1 %vm195_vm2, %v617_v3  ;;  %v1476_v22 = vmul.f32 %v1899_v20, %v2251_v48 }
 0x5ba   :  { %1789 = vmatpush3.msra.mxu1 %v790_v9  ;;  %1790 = vmatprep.mubr.msk.f32.mxu1 %vm2038_vm1, %v2037_v6 }
 0x5bb   :  { %1798 = vmatprep.subr.mxu1 %v2037_v6 }
 0x5bd   :  { %1791 = vmatmul.mubr.msk.f32.vlgmr.msra.gmra.mxu1 %vm195_vm2, %v788_v10 }
 0x5be   :  { %1799 = vmatpush3.msra.mxu1 %v972_v12  ;;  %1800 = vmatprep.mubr.msk.f32.mxu1 %vm2038_vm1, %v2037_v6 }
 0x5bf   :  { %1808 = vmatprep.subr.mxu1 %v2037_v6 }
 0x5c1   :  { %1801 = vmatmul.mubr.msk.f32.vlgmr.msra.gmra.mxu1 %vm195_vm2, %v970_v13 }
 0x5c2   :  { %1809 = vmatpush3.msra.mxu1 %v1138_v16  ;;  %1810 = vmatprep.mubr.msk.f32.mxu1 %vm2038_vm1, %v2037_v6 }
 0x5c3   :  { %1818 = vmatprep.subr.mxu1 %v2037_v6 }
 0x5c5   :  { %1811 = vmatmul.mubr.msk.f32.vlgmr.msra.gmra.mxu1 %vm195_vm2, %v1136_v17 }
 0x5c6   :  { %1819 = vmatpush3.msra.mxu1 %v1308_v19  ;;  %1820 = vmatprep.mubr.msk.f32.mxu1 %vm2038_vm1, %v2037_v6 }
 0x5c7   :  { %1828 = vmatprep.subr.mxu1 %v2037_v6 }
 0x5c9   :  { %1821 = vmatmul.mubr.msk.f32.vlgmr.msra.gmra.mxu1 %vm195_vm2, %v1306_v15 }
 0x5ca   :  { %1829 = vmatpush3.msra.mxu1 %v1478_v21  ;;  %1830 = vmatprep.mubr.msk.f32.mxu1 %vm2038_vm1, %v2037_v6 }
 0x5cd   :  { %1831 = vmatmul.mubr.msk.f32.vlgmr.msra.gmra.mxu1 %vm195_vm2, %v1476_v22 }
 0x675   :  { %v519_v23 = vpop.f32.mrf.mxu1 }
 0x676   :  { %524 = vrot.lane.b32.xlu0 %v519_v23, %s2034_s6 }
 0x677   :  { %v1772_v24 = vpop.f32.mrf.mxu1 }
 0x679   :  { %v690_v25 = vpop.f32.mrf.mxu1 }
 0x67a   :  { %695 = vrot.lane.b32.xlu1 %v690_v25, %s2029_s21 }
 0x67b   :  { %v1782_v26 = vpop.f32.mrf.mxu1 }
 0x67d   :  { %v861_v27 = vpop.f32.mrf.mxu1 }
 0x67e   :  { %866 = vrot.lane.b32.xlu1 %v861_v27, %s2050_s29 }
 0x67f   :  { %v1792_v28 = vpop.f32.mrf.mxu1 }
 0x681   :  { %v1043_v29 = vpop.f32.mrf.mxu1 }
 0x682   :  { %1047 = vst.msk [vmem:[#allocation2 + $0x8] sm:$0xff] %vm195_vm2, %v1043_v29 }
 0x683   :  { %v1802_v6 = vpop.f32.mrf.mxu1 }
 0x685   :  { %v1209_v33 = vpop.f32.mrf.mxu1 }
 0x686   :  { %1214 = vrot.lane.b32.xlu0 %v1209_v33, %s2034_s6 }
 0x687   :  { %v1812_v35 = vpop.f32.mrf.mxu1 }
 0x689   :  { %v1379_v36 = vpop.f32.mrf.mxu1 }
 0x68a   :  { %1384 = vrot.lane.b32.xlu0 %v1379_v36, %s2029_s21  ;;  %s2051_s21 = smov [#allocation12]  }
 0x68b   :  { %v1822_v37 = vpop.f32.mrf.mxu1  ;;  %s1654_s7 = sshll.u32 %s2051_s21, 4  ;;  %s1655_s7 = int_to_ptr.vmem [resolvable:$true] %s1654_s7 }
 0x68c   :  { %s2000_s8 = scalar_lea.vmem %s1655_s7, 256  ;;  %p2005_p12 = scmp.lt.s32.totalorder %s1655_s7, %s1655_s7 }
 0x68d   :  { %v1549_v38 = vpop.f32.mrf.mxu1  ;;  %p2001_p11 = scmp.ne.s32.totalorder %s1655_s7, %s2000_s8  ;;  %p2006_p13 = scmp.lt.s32.totalorder %s2000_s8, %s2000_s8 }
 0x68e   :  { %1554 = vrot.lane.b32.xlu1 %v1549_v38, %s2050_s29 }
 0x68f   :  { %v1832_v39 = vpop.f32.mrf.mxu1  ;;  %p2007_p0 = por %p2006_p13, %p2005_p12 }
 0x691   :  { %p2008_p1 = pnand %p2007_p0, %p2001_p11 }
 0x6e8   :  { %v525_v40 = vpop.permute.xlu0 %524 }
 0x6e9   :  { %528 = vst.msk [vmem:[#allocation2] sm:$0xff] %vm527_vm3, %v525_v40 }
 0x6ec   :  { %v696_v41 = vpop.permute.xlu1 %695 }
 0x6ed   :  { %699 = vst.msk [vmem:[#allocation2] sm:$0xff] %vm698_vm4, %v696_v41 }
 0x6f0   :  { %v867_v42 = vpop.permute.xlu1 %866 }
 0x6f1   :  { %870 = vst.msk [vmem:[#allocation2] sm:$0xff] %vm869_vm5, %v867_v42 }
 0x6f8   :  { %v1215_v43 = vpop.permute.xlu0 %1214  ;;  %v1558_v44 = vld [vmem:[#allocation2] sm:$0xff] }
 0x6f9   :  { %1217 = vst.msk [vmem:[#allocation2 + $0x8] sm:$0xff] %vm527_vm3, %v1215_v43  ;;  %1841 = vmatprep.mubr.msk.f32.mxu0 %vm95_vm0, %v1558_v44 }
 0x6fc   :  { %v1385_v45 = vpop.permute.xlu0 %1384 }
 0x6fd   :  { %1387 = vst.msk [vmem:[#allocation2 + $0x8] sm:$0xff] %vm698_vm4, %v1385_v45 }
 0x700   :  { %v1555_v46 = vpop.permute.xlu1 %1554 }
 0x701   :  { %1557 = vst.msk [vmem:[#allocation2 + $0x8] sm:$0xff] %vm869_vm5, %v1555_v46 }
 0x708   :  { %v1559_v47 = vld [vmem:[#allocation2 + $0x8] sm:$0xff] }
 0x709   :  { %1842 = vmatmul.mubr.msk.f32.vlgmr.msra.gmra.mxu0 %vm95_vm0, %v1559_v47 }
 0x7c9   :  { %v1843_v48 = vpop.f32.mrf.mxu0 }
 0x7ca   :  { %v1646_v49 = vadd.f32 %v1843_v48, %v2115_v5 }
 0x7cb   :  { %v1636_v50 = vpop.f32.mrf.mxu0 }
 0x7cc   :  { %1648 = vst.msk [vmem:[#allocation12 + $0x8] sm:$0xff] %vm95_vm0, %v1646_v49  ;;  %v1645_v51 = vadd.f32 %v1636_v50, %v2111_v2 }
 0x7ce   :  { %1647 = vst.msk [vmem:[#allocation12] sm:$0xff] %vm95_vm0, %v1645_v51 }
 0x7cf   :  { %2011 = shalt.err (!%p2008_p1)
}
 0x7d0   :  { %1660 = dma.vmem_to_hbm [thread:$0]  %s1655_s7, 256, %s2322_s5, [#allocation5], %s2033_s30, %s2033_s30, %s2034_s6  }
 0x7d1   :  { %2026 = dma.done.wait [#allocation5], 256  }
 0x7d2   :  { %2027 = vsyncadd [#allocation5], 4294967040 }
 0x7d3   :  { %1664 = vsyncpa [#allocation4], 1 }
 0x7d4   :  { %1665 = vsyncpa [#allocation7], 1 }
 0x7d5   :  { %1666 = vsyncpa [#allocation10], 1 }
 0x7d6   :  { %1667 = vsyncpa [#allocation5], 1 }

</bundles_post_ra>
